<compile_context>
chip_gen: v5e
topology: v5e:2x2
jax: 0.10.0
libtpu: 0.0.40
codegen_flags: <defaults>
</compile_context>

<pallas_src>
import numpy as np
import jax
import jax.numpy as jnp
from jax import lax
from jax.experimental import pallas as pl
from jax.experimental.pallas import tpu as pltpu


def _round_up(x, m):
    return (x + m - 1) // m * m


def _make_scatter_kernel(tp, tn):
    def kernel(tbl_ref, cnt_ref, idx_ref, vf_ref, out_ref):
        # tbl_ref : (n_tiles*MC,) SMEM int32 — chunk schedule (drives the index_maps)
        # cnt_ref : (n_tiles,)    SMEM int32 — #valid chunks for this canvas tile
        # idx_ref : (1, tn)       VMEM int32 — sorted fused scatter indices (lane-dense)
        # vf_ref  : (C, tn)       VMEM f32   — pillar features sorted by scatter index
        # out_ref : (C, tp)       VMEM f32   — canvas tile, resident across chunk axis
        i = pl.program_id(0)
        k = pl.program_id(1)

        @pl.when(k == 0)
        def _init():
            out_ref[...] = jnp.zeros_like(out_ref)

        @pl.when(k < cnt_ref[i])
        def _accum():
            # onehot[c, r] = (idx[r] - base == c): lane-major idx, sublane iota.
            rel = idx_ref[...] - i * tp                               # (1, tn)
            col = lax.broadcasted_iota(jnp.int32, (tp, tn), 0)        # (tp, tn)
            onehot = (rel == col).astype(vf_ref.dtype)                # (tp, tn)
            # out[ch, c] += sum_r vf[ch, r] * onehot[c, r]   ("NT" contraction)
            contrib = lax.dot_general(
                vf_ref[...], onehot,
                dimension_numbers=(((1,), (1,)), ((), ())),
                preferred_element_type=jnp.float32)                    # (C, tp)
            out_ref[...] += contrib.astype(out_ref.dtype)

    return kernel


def point_pillars_scatter(voxel_features, coords, batch_size, output_shape,
                          num_input_features=64):
    """voxel_features: (C, N) float32; coords: (N, 4) int [batch, z, y, x]."""
    ny, nx = int(output_shape[2]), int(output_shape[3])
    c, n = voxel_features.shape
    assert c == num_input_features
    # Original forward only builds the batch-0 canvas; view() is only shape-consistent
    # for batch_size == 1.
    assert batch_size == 1
    p = ny * nx

    # ---- tiling --------------------------------------------------------------
    tp = min(1024, _round_up(p, 128))    # canvas-tile width (lane-dense, mult of 128)
    tn = min(1024, _round_up(n, 128))    # pillar-chunk size (mult of 128)
    p_pad = _round_up(p, tp)
    n_pad = _round_up(n, tn)
    n_tiles = p_pad // tp                # >= 2 on realistic canvases -> v7x 2-TC split
    n_chunks = n_pad // tn
    # With unique pillar coords, a tile of tp columns receives <= tp pillars, which
    # span at most cdiv(tp, tn) + 1 sorted chunks.
    max_chunks = min(pl.cdiv(tp, tn) + 1, n_chunks)

    # ---- fused, validated scatter index; invalid rows -> sentinel -------------
    coords = coords.astype(jnp.int32)
    b, y, x = coords[:, 0], coords[:, 2], coords[:, 3]
    sentinel = jnp.int32(p_pad)          # > any real canvas column; never matches a tile
    idx = y * nx + x
    valid = (b == 0) & (y >= 0) & (y < ny) & (x >= 0) & (x < nx)
    idx = jnp.where(valid, idx, sentinel)
    if n_pad != n:
        idx = jnp.concatenate([idx, jnp.full((n_pad - n,), sentinel, jnp.int32)])
        vf = jnp.pad(voxel_features, ((0, 0), (0, n_pad - n)))
    else:
        vf = voxel_features

    # ---- sort pillars by target column; build per-tile chunk schedule ---------
    order = jnp.argsort(idx)
    idx_s = idx[order]
    vf_s = jnp.take(vf, order, axis=1)

    tile_lo = jnp.arange(n_tiles, dtype=jnp.int32) * tp
    start = jnp.searchsorted(idx_s, tile_lo, side='left').astype(jnp.int32)
    end = jnp.searchsorted(idx_s, tile_lo + tp, side='left').astype(jnp.int32)
    chunk_start = start // tn
    cnt = jnp.where(end > start,
                    (end - 1) // tn - chunk_start + 1,
                    0).astype(jnp.int32)                      # (n_tiles,)
    k_iota = jnp.arange(max_chunks, dtype=jnp.int32)[None, :]
    tbl = chunk_start[:, None] + jnp.minimum(k_iota, jnp.maximum(cnt[:, None] - 1, 0))
    tbl = jnp.minimum(tbl, n_chunks - 1).astype(jnp.int32).reshape(-1)  # (n_tiles*MC,)

    idx2d = idx_s.reshape(1, n_pad)      # lane-dense delivery of the sorted indices
    mc = max_chunks

    canvas = pl.pallas_call(
        _make_scatter_kernel(tp, tn),
        out_shape=jax.ShapeDtypeStruct((c, p_pad), voxel_features.dtype),
        grid_spec=pltpu.PrefetchScalarGridSpec(
            num_scalar_prefetch=2,
            grid=(n_tiles, max_chunks),
            in_specs=[
                # sorted fused indices, chunk selected by the prefetched schedule
                pl.BlockSpec((1, tn), lambda i, k, tbl_r, cnt_r: (0, tbl_r[i * mc + k])),
                # sorted voxel features, same data-dependent chunk index
                pl.BlockSpec((c, tn), lambda i, k, tbl_r, cnt_r: (0, tbl_r[i * mc + k])),
            ],
            out_specs=pl.BlockSpec((c, tp), lambda i, k, tbl_r, cnt_r: (0, i)),
        ),
        compiler_params=pltpu.CompilerParams(
            dimension_semantics=("parallel", "arbitrary"),
            vmem_limit_bytes=40 * 1024 * 1024),
    )(tbl, cnt, idx2d, vf_s)

    if p_pad != p:
        canvas = canvas[:, :p]
    return canvas.reshape(batch_size, c, ny, nx)


def _reference(voxel_features, coords, batch_size, output_shape):
    ny, nx = output_shape[2], output_shape[3]
    vf = np.asarray(voxel_features)
    co = np.asarray(coords)
    c = vf.shape[0]
    canvas = np.zeros((c, ny * nx), dtype=vf.dtype)
    mask = co[:, 0] == 0
    idx = co[mask, 2] * nx + co[mask, 3]
    canvas[:, idx] = vf[:, mask]
    return canvas.reshape(batch_size, c, ny, nx)


if __name__ == "__main__":
    key = jax.random.PRNGKey(0)
    k_vf, k_perm = jax.random.split(key)

    # Small shapes: C = 64 (module default num_input_features), ny = nx = 16,
    # N = 24 non-empty pillars, batch_size = 1.
    C, NY, NX, N = 64, 16, 16, 24
    BATCH = 1
    output_shape = (1, 1, NY, NX)

    voxel_features = jax.random.normal(k_vf, (C, N), dtype=jnp.float32)

    # Unique canvas slots; last 4 pillars are tagged batch=1 and must be dropped.
    perm = jax.random.permutation(k_perm, NY * NX)[:N]
    ys = (perm // NX).astype(jnp.int32)
    xs = (perm % NX).astype(jnp.int32)
    batch_col = jnp.concatenate(
        [jnp.zeros((N - 4,), jnp.int32), jnp.ones((4,), jnp.int32)])
    z_col = jnp.zeros((N,), jnp.int32)
    coords = jnp.stack([batch_col, z_col, ys, xs], axis=1)  # (N, 4)

    out = point_pillars_scatter(voxel_features, coords, BATCH, output_shape,
                                num_input_features=C)
    out = jax.block_until_ready(out)

    ref = _reference(voxel_features, coords, BATCH, output_shape)
    assert out.shape == (BATCH, C, NY, NX)
    np.testing.assert_allclose(np.asarray(out), ref, rtol=1e-5, atol=1e-5)

    print("KERNEL_OK")
</pallas_src>

<mosaic_0001>
module attributes {stable_mosaic.version = 11 : i64} {
  func.func @kernel(%arg0: i32, %arg1: i32, %arg2: memref<1xi32, #tpu.memory_space<smem>>, %arg3: memref<1xi32, #tpu.memory_space<smem>>, %arg4: memref<1x128xi32, #tpu.memory_space<vmem>>, %arg5: memref<64x128xf32, #tpu.memory_space<vmem>>, %arg6: memref<64x256xf32, #tpu.memory_space<vmem>>) attributes {dimension_semantics = [#tpu.dimension_semantics<parallel>, #tpu.dimension_semantics<arbitrary>], iteration_bounds = array<i64: 1, 1>, scalar_prefetch = 2 : i64, scratch_operands = 0 : i64, tpu.core_type = #tpu.core_type<tc>, window_params = [{transform_indices = @transform_0, window_bounds = array<i64: 1, 128>}, {transform_indices = @transform_1, window_bounds = array<i64: 64, 128>}, {transform_indices = @transform_2, window_bounds = array<i64: 64, 256>}]} {
    %c0_i32 = arith.constant 0 : i32
    %0 = arith.cmpi eq, %arg1, %c0_i32 : i32
    %1 = arith.extui %0 : i1 to i32
    %c0_i32_0 = arith.constant 0 : i32
    %2 = arith.cmpi ne, %1, %c0_i32_0 : i32
    scf.if %2 {
      %cst = arith.constant 0.000000e+00 : f32
      %8 = vector.broadcast %cst : f32 to vector<64x256xf32>
      %c0 = arith.constant 0 : index
      %c0_2 = arith.constant 0 : index
      %9 = vector.load %arg6[%c0, %c0_2] : memref<64x256xf32, #tpu.memory_space<vmem>>, vector<64x256xf32>
      tpu.vector_store %arg6[%c0, %c0_2], %8 {strides = array<i32>} : memref<64x256xf32, #tpu.memory_space<vmem>>, vector<64x256xf32>,
    } else {
    }
    %3 = arith.index_cast %arg0 : i32 to index
    %4 = memref.load %arg3[%3] : memref<1xi32, #tpu.memory_space<smem>>
    %5 = arith.cmpi slt, %arg1, %4 : i32
    %6 = arith.extui %5 : i1 to i32
    %c0_i32_1 = arith.constant 0 : i32
    %7 = arith.cmpi ne, %6, %c0_i32_1 : i32
    scf.if %7 {
      %c0 = arith.constant 0 : index
      %c0_2 = arith.constant 0 : index
      %8 = vector.load %arg4[%c0, %c0_2] : memref<1x128xi32, #tpu.memory_space<vmem>>, vector<1x128xi32>
      %c256_i32 = arith.constant 256 : i32
      %9 = arith.muli %arg0, %c256_i32 : i32
      %10 = vector.broadcast %9 : i32 to vector<1x128xi32>
      %11 = arith.subi %8, %10 : vector<1x128xi32>
      %12 = tpu.iota {dimensions = array<i32: 0>} : vector<256x128xi32>
      %13 = vector.broadcast %11 : vector<1x128xi32> to vector<256x128xi32>
      %14 = arith.cmpi eq, %13, %12 : vector<256x128xi32>
      %15 = arith.extui %14 : vector<256x128xi1> to vector<256x128xi32>
      %16 = arith.sitofp %15 : vector<256x128xi32> to vector<256x128xf32>
      %c0_3 = arith.constant 0 : index
      %c0_4 = arith.constant 0 : index
      %17 = vector.load %arg5[%c0_3, %c0_4] : memref<64x128xf32, #tpu.memory_space<vmem>>, vector<64x128xf32>
      %cst = arith.constant dense<0.000000e+00> : vector<64x256xf32>
      %18 = tpu.matmul %17, %16, %cst {dimension_numbers = #tpu.dot_dimension_numbers<[1], [1], [0], [0], [0, 0, 1, 0], [], []>} : vector<64x128xf32>, vector<256x128xf32>, vector<64x256xf32> -> vector<64x256xf32>
      %c0_5 = arith.constant 0 : index
      %c0_6 = arith.constant 0 : index
      %19 = vector.load %arg6[%c0_5, %c0_6] : memref<64x256xf32, #tpu.memory_space<vmem>>, vector<64x256xf32>
      %20 = arith.addf %19, %18 : vector<64x256xf32>
      %c0_7 = arith.constant 0 : index
      %c0_8 = arith.constant 0 : index
      %21 = vector.load %arg6[%c0_7, %c0_8] : memref<64x256xf32, #tpu.memory_space<vmem>>, vector<64x256xf32>
      tpu.vector_store %arg6[%c0_7, %c0_8], %20 {strides = array<i32>} : memref<64x256xf32, #tpu.memory_space<vmem>>, vector<64x256xf32>,
    } else {
    }
    return
  }
  func.func @transform_0(%arg0: i32, %arg1: i32, %arg2: memref<1xi32, #tpu.memory_space<smem>>, %arg3: memref<1xi32, #tpu.memory_space<smem>>) -> (i32, i32) {
    %c1_i32 = arith.constant 1 : i32
    %0 = arith.muli %arg0, %c1_i32 : i32
    %1 = arith.addi %0, %arg1 : i32
    %2 = arith.index_cast %1 : i32 to index
    %3 = memref.load %arg2[%2] : memref<1xi32, #tpu.memory_space<smem>>
    %c0_i32 = arith.constant 0 : i32
    %c0_i32_0 = arith.constant 0 : i32
    return %c0_i32, %3 : i32, i32
  }
  func.func @transform_1(%arg0: i32, %arg1: i32, %arg2: memref<1xi32, #tpu.memory_space<smem>>, %arg3: memref<1xi32, #tpu.memory_space<smem>>) -> (i32, i32) {
    %c1_i32 = arith.constant 1 : i32
    %0 = arith.muli %arg0, %c1_i32 : i32
    %1 = arith.addi %0, %arg1 : i32
    %2 = arith.index_cast %1 : i32 to index
    %3 = memref.load %arg2[%2] : memref<1xi32, #tpu.memory_space<smem>>
    %c0_i32 = arith.constant 0 : i32
    %c0_i32_0 = arith.constant 0 : i32
    return %c0_i32, %3 : i32, i32
  }
  func.func @transform_2(%arg0: i32, %arg1: i32, %arg2: memref<1xi32, #tpu.memory_space<smem>>, %arg3: memref<1xi32, #tpu.memory_space<smem>>) -> (i32, i32) {
    %c0_i32 = arith.constant 0 : i32
    %c0_i32_0 = arith.constant 0 : i32
    return %c0_i32, %arg0 : i32, i32
  }
}

</mosaic_0001>

<bundles_post_ra>
// kernel: tpu_custom_call.1
= control target key start
LH: loop header
LB: loop body
LE: loop exit
PB: predicated region body
PF: predicated region fallthrough
CT: control target
= control target key end

     0   :  { %11 = vsyncpa [#allocation6], 0  ;;  %s730_s0 = inlined_call_operand.<no memory space> [shape: s32[1], index: 0, kind: input, shape index: {}]   ;;  %s731_s1 = inlined_call_operand.<no memory space> [shape: s32[1], index: 1, kind: input, shape index: {}]   ;;  %s732_s2 = inlined_call_operand.vmem [shape: s32[1,128], index: 2, kind: input, shape index: {}]   ;;  %s733_s3 = inlined_call_operand.hbm [shape: f32[64,128], index: 3, kind: input, shape index: {}]   ;;  %s734_s4 = inlined_call_operand.hbm [shape: f32[64,256], index: 4, kind: output, shape index: {}]  }
   0x1   :  { %12 = vsyncpa [#allocation7], 0  ;;  %s378_s17 = sshll.u32 %s730_s0, 3  ;;  %s538_s21 = smov [#allocation5]  }
   0x2   :  { %s29_s20 = scalar_lea.hbm %s733_s3, %s378_s17  ;;  %s32_s22 = sshll.u32 %s538_s21, 4  ;;  %s33_s22 = int_to_ptr.vmem [resolvable:$true] %s32_s22 }
   0x3   :  { %s30_s23 = sshll.u32 %s29_s20, 4  ;;  %s490_s28 = scalar_lea.hbm %s733_s3, 64  ;;  %s31_s23 = int_to_ptr.hbm [resolvable:$true] %s30_s23 }
   0x4   :  { %s486_s24 = sshra.s32 %s31_s23, 4  ;;  %s487_s24 = int_to_ptr.hbm [resolvable:$true] %s486_s24 }
   0x5   :  { %s488_s25 = scalar_lea.hbm %s487_s24, 64  ;;  %p491_p1 = scmp.lt.s32.totalorder %s487_s24, %s733_s3 }
   0x6   :  { %p489_p0 = scmp.ne.s32.totalorder %s487_s24, %s488_s25  ;;  %p492_p2 = scmp.lt.s32.totalorder %s490_s28, %s488_s25 }
   0x8   :  { %p493_p3 = por %p492_p2, %p491_p1 }
   0xa   :  { %p494_p4 = pnand %p493_p3, %p489_p0 }
   0xc   :  { %497 = shalt.err (!%p494_p4)
}
   0xd   :  { %s539_s5 = smov 128   ;;  %s540_s6 = smov 8  }
   0xe   :  { %38 = dma.hbm_to_vmem [thread:$0]  %s31_s23, 1024, %s33_s22, [#allocation6], %s539_s5, %s539_s5, %s540_s6  }
   0xf   :  { %534 = dma.done.wait [#allocation6], 1024  }
  0x10   :  { %535 = vsyncadd [#allocation6], 4294966272  ;;  %p50_p5 = scmp.lt.s32.totalorder %s730_s0, 0  ;;  %v541_v0 = vmov 0.0   ;;  %p380_p6 = scmp.le.s32.totalorder %s731_s1, 0 }
  0x11   :  { %61 = vst [vmem:[#allocation8] sm:$0xff] %v541_v0 }
  0x12   :  { %s736_s0 = smov (!%p50_p5, %s730_s0), 0  ;;  %62 = vst [vmem:[#allocation8 + $0x8] sm:$0xff] %v541_v0 }
  0x13   :  { %63 = vst [vmem:[#allocation8 + $0x10] sm:$0xff] %v541_v0  ;;  %s52_s12 = scalar_lea.vmem %s732_s2, %s736_s0 }
  0x14   :  { %64 = vst [vmem:[#allocation8 + $0x18] sm:$0xff] %v541_v0 }
  0x15   :  { %65 = vst [vmem:[#allocation8 + $0x20] sm:$0xff] %v541_v0 }
  0x16   :  { %66 = vst [vmem:[#allocation8 + $0x28] sm:$0xff] %v541_v0 }
  0x17   :  { %67 = vst [vmem:[#allocation8 + $0x30] sm:$0xff] %v541_v0 }
  0x18   :  { %68 = vst [vmem:[#allocation8 + $0x38] sm:$0xff] %v541_v0 }
  0x19   :  { %69 = vst [vmem:[#allocation8 + $0x40] sm:$0xff] %v541_v0 }
  0x1a   :  { %70 = vst [vmem:[#allocation8 + $0x48] sm:$0xff] %v541_v0 }
  0x1b   :  { %71 = vst [vmem:[#allocation8 + $0x50] sm:$0xff] %v541_v0 }
  0x1c   :  { %72 = vst [vmem:[#allocation8 + $0x58] sm:$0xff] %v541_v0  ;;  %81 = sbr.rel (%p380_p6) target bundleno = 263 (0x107), region = 21 }
  0x1d   :  { %73 = vst [vmem:[#allocation8 + $0x60] sm:$0xff] %v541_v0 }
  0x1e   :  { %74 = vst [vmem:[#allocation8 + $0x68] sm:$0xff] %v541_v0 }
  0x1f   :  { %75 = vst [vmem:[#allocation8 + $0x70] sm:$0xff] %v541_v0 }
  0x20   :  { %76 = vst [vmem:[#allocation8 + $0x78] sm:$0xff] %v541_v0 }
  0x21   :  { %v86_v1 = vlaneseq  ;;  %v597_v3 = vld [vmem:[%s52_s12] ss:$0 sm:$0xff]  ;;  %v542_v8 = vmov 1.0   ;;  %v221_v38 = vld [vmem:[#allocation5 + $0x28] sm:$0xff]  ;;  %v222_v40 = vld [vmem:[#allocation5 + $0x30] sm:$0xff] }
  0x22   :  { %v220_v36 = vld [vmem:[#allocation5 + $0x20] sm:$0xff]  ;;  %v217_v39 = vld [vmem:[#allocation5 + $0x8] sm:$0xff]  ;;  %v218_v41 = vld [vmem:[#allocation5 + $0x10] sm:$0xff] }
  0x23   :  { %v595_v2 = vshrl.u32 %v86_v1, 7  ;;  %v216_v37 = vld [vmem:[#allocation5] sm:$0xff]  ;;  %v223_v42 = vld [vmem:[#allocation5 + $0x38] sm:$0xff]  ;;  %v307_v45 = vld [vmem:[#allocation8 + $0x8] sm:$0xff] }
  0x24   :  { %v219_v43 = vld [vmem:[#allocation5 + $0x18] sm:$0xff]  ;;  %v306_v44 = vld [vmem:[#allocation8] sm:$0xff]  ;;  %v315_v51 = vld [vmem:[#allocation8 + $0x48] sm:$0xff] }
  0x25   :  { %v102_v4 = vadd.s32 120, %v595_v2  ;;  %v118_v5 = vadd.s32 248, %v595_v2  ;;  %v101_v6 = vadd.s32 112, %v595_v2  ;;  %v117_v7 = vadd.s32 240, %v595_v2  ;;  %v314_v50 = vld [vmem:[#allocation8 + $0x40] sm:$0xff]  ;;  %v308_v56 = vld [vmem:[#allocation8 + $0x10] sm:$0xff] }
  0x26   :  { %v100_v9 = vadd.s32 104, %v595_v2  ;;  %v116_v10 = vadd.s32 232, %v595_v2  ;;  %v99_v11 = vadd.s32 96, %v595_v2  ;;  %v115_v12 = vadd.s32 224, %v595_v2  ;;  %v309_v57 = vld [vmem:[#allocation8 + $0x18] sm:$0xff]  ;;  %v316_v62 = vld [vmem:[#allocation8 + $0x50] sm:$0xff] }
  0x27   :  { %vm135_vm0 = vcmp.eq.s32.totalorder %v597_v3, %v102_v4  ;;  %vm151_vm1 = vcmp.eq.s32.totalorder %v597_v3, %v118_v5  ;;  %vm134_vm2 = vcmp.eq.s32.totalorder %v597_v3, %v101_v6  ;;  %vm150_vm3 = vcmp.eq.s32.totalorder %v597_v3, %v117_v7  ;;  %v317_v63 = vld [vmem:[#allocation8 + $0x58] sm:$0xff]  ;;  %v310_v4 = vld [vmem:[#allocation8 + $0x20] sm:$0xff]  ;;  %v311_v5 = vld [vmem:[#allocation8 + $0x28] sm:$0xff] }
  0x28   :  { %445 = vmatpush.xpose.msk.msra.mxu2 %vm135_vm0, %v542_v8  ;;  %461 = vmatpush.xpose.msk.msra.mxu3 %vm151_vm1, %v542_v8  ;;  %vm133_vm4 = vcmp.eq.s32.totalorder %v597_v3, %v100_v9  ;;  %vm149_vm5 = vcmp.eq.s32.totalorder %v597_v3, %v116_v10  ;;  %vm132_vm6 = vcmp.eq.s32.totalorder %v597_v3, %v99_v11  ;;  %v98_v13 = vadd.s32 88, %v595_v2  ;;  %v318_v10 = vld [vmem:[#allocation8 + $0x60] sm:$0xff]  ;;  %v319_v11 = vld [vmem:[#allocation8 + $0x68] sm:$0xff] }
  0x29   :  { %413 = vmatpush.xpose.msk.msra.mxu0 %vm135_vm0, %v542_v8  ;;  %429 = vmatpush.xpose.msk.msra.mxu1 %vm151_vm1, %v542_v8  ;;  %vm148_vm7 = vcmp.eq.s32.totalorder %v597_v3, %v115_v12  ;;  %v114_v14 = vadd.s32 216, %v595_v2  ;;  %v97_v15 = vadd.s32 80, %v595_v2  ;;  %v113_v16 = vadd.s32 208, %v595_v2 }
  0x2a   :  { %vm131_vm8 = vcmp.eq.s32.totalorder %v597_v3, %v98_v13  ;;  %v96_v17 = vadd.s32 72, %v595_v2  ;;  %v112_v18 = vadd.s32 200, %v595_v2  ;;  %v95_v19 = vadd.s32 64, %v595_v2 }
  0x2b   :  { %vm147_vm9 = vcmp.eq.s32.totalorder %v597_v3, %v114_v14  ;;  %vm130_vm10 = vcmp.eq.s32.totalorder %v597_v3, %v97_v15  ;;  %vm146_vm11 = vcmp.eq.s32.totalorder %v597_v3, %v113_v16  ;;  %v111_v20 = vadd.s32 192, %v595_v2  ;;  %v312_v16 = vld [vmem:[#allocation8 + $0x30] sm:$0xff] }
  0x2c   :  { %446 = vmatpush.xpose.msk.msra.mxu2 %vm134_vm2, %v542_v8  ;;  %462 = vmatpush.xpose.msk.msra.mxu3 %vm150_vm3, %v542_v8  ;;  %vm129_vm12 = vcmp.eq.s32.totalorder %v597_v3, %v96_v17  ;;  %vm145_vm13 = vcmp.eq.s32.totalorder %v597_v3, %v112_v18  ;;  %vm128_vm14 = vcmp.eq.s32.totalorder %v597_v3, %v95_v19  ;;  %v94_v21 = vadd.s32 56, %v595_v2  ;;  %v313_v17 = vld [vmem:[#allocation8 + $0x38] sm:$0xff] }
  0x2d   :  { %414 = vmatpush.xpose.msk.msra.mxu0 %vm134_vm2, %v542_v8  ;;  %430 = vmatpush.xpose.msk.msra.mxu1 %vm150_vm3, %v542_v8  ;;  %vm144_vm15 = vcmp.eq.s32.totalorder %v597_v3, %v111_v20  ;;  %v110_v22 = vadd.s32 184, %v595_v2  ;;  %v93_v23 = vadd.s32 48, %v595_v2  ;;  %v109_v24 = vadd.s32 176, %v595_v2 }
  0x2e   :  { %vm127_vm0 = vcmp.eq.s32.totalorder %v597_v3, %v94_v21  ;;  %v92_v25 = vadd.s32 40, %v595_v2  ;;  %v108_v26 = vadd.s32 168, %v595_v2  ;;  %v91_v27 = vadd.s32 32, %v595_v2 }
  0x2f   :  { %vm143_vm1 = vcmp.eq.s32.totalorder %v597_v3, %v110_v22  ;;  %vm126_vm2 = vcmp.eq.s32.totalorder %v597_v3, %v93_v23  ;;  %vm142_vm3 = vcmp.eq.s32.totalorder %v597_v3, %v109_v24  ;;  %v107_v28 = vadd.s32 160, %v595_v2  ;;  %v320_v22 = vld [vmem:[#allocation8 + $0x70] sm:$0xff]  ;;  %v321_v23 = vld [vmem:[#allocation8 + $0x78] sm:$0xff] }
  0x30   :  { %447 = vmatpush.xpose.msk.msra.mxu2 %vm133_vm4, %v542_v8  ;;  %463 = vmatpush.xpose.msk.msra.mxu3 %vm149_vm5, %v542_v8  ;;  %v90_v29 = vadd.s32 24, %v595_v2  ;;  %v106_v30 = vadd.s32 152, %v595_v2  ;;  %v89_v31 = vadd.s32 16, %v595_v2  ;;  %v105_v32 = vadd.s32 144, %v595_v2 }
  0x31   :  { %415 = vmatpush.xpose.msk.msra.mxu0 %vm133_vm4, %v542_v8  ;;  %431 = vmatpush.xpose.msk.msra.mxu1 %vm149_vm5, %v542_v8  ;;  %vm125_vm4 = vcmp.eq.s32.totalorder %v597_v3, %v92_v25  ;;  %vm141_vm5 = vcmp.eq.s32.totalorder %v597_v3, %v108_v26  ;;  %v88_v33 = vadd.s32 8, %v595_v2  ;;  %v104_v34 = vadd.s32 136, %v595_v2 }
  0x32   :  { %v103_v35 = vadd.s32 128, %v595_v2 }
  0x34   :  { %448 = vmatpush.xpose.msk.msra.mxu2 %vm132_vm6, %v542_v8  ;;  %464 = vmatpush.xpose.msk.msra.mxu3 %vm148_vm7, %v542_v8 }
  0x35   :  { %416 = vmatpush.xpose.msk.msra.mxu0 %vm132_vm6, %v542_v8  ;;  %432 = vmatpush.xpose.msk.msra.mxu1 %vm148_vm7, %v542_v8  ;;  %vm124_vm6 = vcmp.eq.s32.totalorder %v597_v3, %v91_v27  ;;  %vm140_vm7 = vcmp.eq.s32.totalorder %v597_v3, %v107_v28 }
  0x38   :  { %449 = vmatpush.xpose.msk.msra.mxu2 %vm131_vm8, %v542_v8  ;;  %465 = vmatpush.xpose.msk.msra.mxu3 %vm147_vm9, %v542_v8 }
  0x39   :  { %417 = vmatpush.xpose.msk.msra.mxu0 %vm131_vm8, %v542_v8  ;;  %433 = vmatpush.xpose.msk.msra.mxu1 %vm147_vm9, %v542_v8  ;;  %vm123_vm8 = vcmp.eq.s32.totalorder %v597_v3, %v90_v29  ;;  %vm139_vm9 = vcmp.eq.s32.totalorder %v597_v3, %v106_v30 }
  0x3c   :  { %450 = vmatpush.xpose.msk.msra.mxu2 %vm130_vm10, %v542_v8  ;;  %466 = vmatpush.xpose.msk.msra.mxu3 %vm146_vm11, %v542_v8 }
  0x3d   :  { %418 = vmatpush.xpose.msk.msra.mxu0 %vm130_vm10, %v542_v8  ;;  %434 = vmatpush.xpose.msk.msra.mxu1 %vm146_vm11, %v542_v8  ;;  %vm122_vm10 = vcmp.eq.s32.totalorder %v597_v3, %v89_v31  ;;  %vm138_vm11 = vcmp.eq.s32.totalorder %v597_v3, %v105_v32 }
  0x40   :  { %451 = vmatpush.xpose.msk.msra.mxu2 %vm129_vm12, %v542_v8  ;;  %467 = vmatpush.xpose.msk.msra.mxu3 %vm145_vm13, %v542_v8 }
  0x41   :  { %419 = vmatpush.xpose.msk.msra.mxu0 %vm129_vm12, %v542_v8  ;;  %435 = vmatpush.xpose.msk.msra.mxu1 %vm145_vm13, %v542_v8  ;;  %vm121_vm12 = vcmp.eq.s32.totalorder %v597_v3, %v88_v33  ;;  %vm137_vm13 = vcmp.eq.s32.totalorder %v597_v3, %v104_v34 }
  0x44   :  { %452 = vmatpush.xpose.msk.msra.mxu2 %vm128_vm14, %v542_v8  ;;  %468 = vmatpush.xpose.msk.msra.mxu3 %vm144_vm15, %v542_v8 }
  0x45   :  { %420 = vmatpush.xpose.msk.msra.mxu0 %vm128_vm14, %v542_v8  ;;  %436 = vmatpush.xpose.msk.msra.mxu1 %vm144_vm15, %v542_v8  ;;  %vm120_vm14 = vcmp.eq.s32.totalorder %v597_v3, %v595_v2  ;;  %vm136_vm15 = vcmp.eq.s32.totalorder %v597_v3, %v103_v35 }
  0x48   :  { %453 = vmatpush.xpose.msk.msra.mxu2 %vm127_vm0, %v542_v8  ;;  %469 = vmatpush.xpose.msk.msra.mxu3 %vm143_vm1, %v542_v8 }
  0x49   :  { %421 = vmatpush.xpose.msk.msra.mxu0 %vm127_vm0, %v542_v8  ;;  %437 = vmatpush.xpose.msk.msra.mxu1 %vm143_vm1, %v542_v8 }
  0x4c   :  { %454 = vmatpush.xpose.msk.msra.mxu2 %vm126_vm2, %v542_v8  ;;  %470 = vmatpush.xpose.msk.msra.mxu3 %vm142_vm3, %v542_v8 }
  0x4d   :  { %422 = vmatpush.xpose.msk.msra.mxu0 %vm126_vm2, %v542_v8  ;;  %438 = vmatpush.xpose.msk.msra.mxu1 %vm142_vm3, %v542_v8 }
  0x50   :  { %455 = vmatpush.xpose.msk.msra.mxu2 %vm125_vm4, %v542_v8  ;;  %471 = vmatpush.xpose.msk.msra.mxu3 %vm141_vm5, %v542_v8 }
  0x51   :  { %423 = vmatpush.xpose.msk.msra.mxu0 %vm125_vm4, %v542_v8  ;;  %439 = vmatpush.xpose.msk.msra.mxu1 %vm141_vm5, %v542_v8 }
  0x54   :  { %456 = vmatpush.xpose.msk.msra.mxu2 %vm124_vm6, %v542_v8  ;;  %472 = vmatpush.xpose.msk.msra.mxu3 %vm140_vm7, %v542_v8 }
  0x55   :  { %424 = vmatpush.xpose.msk.msra.mxu0 %vm124_vm6, %v542_v8  ;;  %440 = vmatpush.xpose.msk.msra.mxu1 %vm140_vm7, %v542_v8 }
  0x58   :  { %457 = vmatpush.xpose.msk.msra.mxu2 %vm123_vm8, %v542_v8  ;;  %473 = vmatpush.xpose.msk.msra.mxu3 %vm139_vm9, %v542_v8 }
  0x59   :  { %425 = vmatpush.xpose.msk.msra.mxu0 %vm123_vm8, %v542_v8  ;;  %441 = vmatpush.xpose.msk.msra.mxu1 %vm139_vm9, %v542_v8 }
  0x5c   :  { %458 = vmatpush.xpose.msk.msra.mxu2 %vm122_vm10, %v542_v8  ;;  %474 = vmatpush.xpose.msk.msra.mxu3 %vm138_vm11, %v542_v8 }
  0x5d   :  { %426 = vmatpush.xpose.msk.msra.mxu0 %vm122_vm10, %v542_v8  ;;  %442 = vmatpush.xpose.msk.msra.mxu1 %vm138_vm11, %v542_v8 }
  0x60   :  { %459 = vmatpush.xpose.msk.msra.mxu2 %vm121_vm12, %v542_v8  ;;  %475 = vmatpush.xpose.msk.msra.mxu3 %vm137_vm13, %v542_v8 }
  0x61   :  { %427 = vmatpush.xpose.msk.msra.mxu0 %vm121_vm12, %v542_v8  ;;  %443 = vmatpush.xpose.msk.msra.mxu1 %vm137_vm13, %v542_v8 }
  0x64   :  { %460 = vmatpush.xpose.msk.msra.mxu2 %vm120_vm14, %v542_v8  ;;  %476 = vmatpush.xpose.msk.msra.mxu3 %vm136_vm15, %v542_v8 }
  0x65   :  { %428 = vmatpush.xpose.msk.msra.mxu0 %vm120_vm14, %v542_v8  ;;  %444 = vmatpush.xpose.msk.msra.mxu1 %vm136_vm15, %v542_v8 }
  0x67   :  { %252 = vmatmul.f32.vlgmr.msra.gmra.mxu2 %v220_v36  ;;  %293 = vmatmul.f32.vlgmr.msra.gmra.mxu3 %v220_v36 }
  0x68   :  { %240 = vmatmul.f32.vlgmr.msra.gmra.mxu0 %v216_v37  ;;  %281 = vmatmul.f32.vlgmr.msra.gmra.mxu1 %v216_v37 }
  0x6f   :  { %255 = vmatmul.f32.gmra.mxu2 %v221_v38  ;;  %296 = vmatmul.f32.gmra.mxu3 %v221_v38 }
  0x70   :  { %243 = vmatmul.f32.gmra.mxu0 %v217_v39  ;;  %284 = vmatmul.f32.gmra.mxu1 %v217_v39 }
  0x77   :  { %258 = vmatmul.f32.gmra.mxu2 %v222_v40  ;;  %299 = vmatmul.f32.gmra.mxu3 %v222_v40 }
  0x78   :  { %246 = vmatmul.f32.gmra.mxu0 %v218_v41  ;;  %287 = vmatmul.f32.gmra.mxu1 %v218_v41 }
  0x7f   :  { %261 = vmatmul.f32.gmra.mxu2 %v223_v42  ;;  %302 = vmatmul.f32.gmra.mxu3 %v223_v42 }
  0x80   :  { %249 = vmatmul.f32.gmra.mxu0 %v219_v43  ;;  %290 = vmatmul.f32.gmra.mxu1 %v219_v43 }
  0xe5   :  { %v241_v46 = vpop.f32.mrf.mxu0  ;;  %v282_v47 = vpop.f32.mrf.mxu1 }
  0xe6   :  { %v322_v48 = vadd.f32 %v306_v44, %v241_v46  ;;  %v323_v49 = vadd.f32 %v307_v45, %v282_v47 }
  0xe8   :  { %338 = vst [vmem:[#allocation8] sm:$0xff] %v322_v48 }
  0xe9   :  { %339 = vst [vmem:[#allocation8 + $0x8] sm:$0xff] %v323_v49 }
  0xea   :  { %v253_v52 = vpop.f32.mrf.mxu2  ;;  %v294_v53 = vpop.f32.mrf.mxu3 }
  0xeb   :  { %v330_v54 = vadd.f32 %v314_v50, %v253_v52  ;;  %v331_v55 = vadd.f32 %v315_v51, %v294_v53 }
  0xed   :  { %346 = vst [vmem:[#allocation8 + $0x40] sm:$0xff] %v330_v54  ;;  %v244_v58 = vpop.f32.mrf.mxu0  ;;  %v285_v59 = vpop.f32.mrf.mxu1 }
  0xee   :  { %347 = vst [vmem:[#allocation8 + $0x48] sm:$0xff] %v331_v55  ;;  %v324_v60 = vadd.f32 %v308_v56, %v244_v58  ;;  %v325_v61 = vadd.f32 %v309_v57, %v285_v59 }
  0xf0   :  { %340 = vst [vmem:[#allocation8 + $0x10] sm:$0xff] %v324_v60 }
  0xf1   :  { %341 = vst [vmem:[#allocation8 + $0x18] sm:$0xff] %v325_v61 }
  0xf2   :  { %v256_v0 = vpop.f32.mrf.mxu2  ;;  %v297_v1 = vpop.f32.mrf.mxu3 }
  0xf3   :  { %v332_v2 = vadd.f32 %v316_v62, %v256_v0  ;;  %v333_v3 = vadd.f32 %v317_v63, %v297_v1 }
  0xf5   :  { %348 = vst [vmem:[#allocation8 + $0x50] sm:$0xff] %v332_v2  ;;  %v247_v6 = vpop.f32.mrf.mxu0  ;;  %v288_v7 = vpop.f32.mrf.mxu1 }
  0xf6   :  { %349 = vst [vmem:[#allocation8 + $0x58] sm:$0xff] %v333_v3  ;;  %v326_v8 = vadd.f32 %v310_v4, %v247_v6  ;;  %v327_v9 = vadd.f32 %v311_v5, %v288_v7 }
  0xf8   :  { %342 = vst [vmem:[#allocation8 + $0x20] sm:$0xff] %v326_v8 }
  0xf9   :  { %343 = vst [vmem:[#allocation8 + $0x28] sm:$0xff] %v327_v9 }
  0xfa   :  { %v259_v12 = vpop.f32.mrf.mxu2  ;;  %v300_v13 = vpop.f32.mrf.mxu3 }
  0xfb   :  { %v334_v14 = vadd.f32 %v318_v10, %v259_v12  ;;  %v335_v15 = vadd.f32 %v319_v11, %v300_v13 }
  0xfd   :  { %350 = vst [vmem:[#allocation8 + $0x60] sm:$0xff] %v334_v14  ;;  %v250_v18 = vpop.f32.mrf.mxu0  ;;  %v291_v19 = vpop.f32.mrf.mxu1 }
  0xfe   :  { %351 = vst [vmem:[#allocation8 + $0x68] sm:$0xff] %v335_v15  ;;  %v328_v20 = vadd.f32 %v312_v16, %v250_v18  ;;  %v329_v21 = vadd.f32 %v313_v17, %v291_v19 }
 0x100   :  { %344 = vst [vmem:[#allocation8 + $0x30] sm:$0xff] %v328_v20 }
 0x101   :  { %345 = vst [vmem:[#allocation8 + $0x38] sm:$0xff] %v329_v21 }
 0x102   :  { %v262_v24 = vpop.f32.mrf.mxu2  ;;  %v303_v25 = vpop.f32.mrf.mxu3 }
 0x103   :  { %v336_v26 = vadd.f32 %v320_v22, %v262_v24  ;;  %v337_v27 = vadd.f32 %v321_v23, %v303_v25 }
 0x105   :  { %352 = vst [vmem:[#allocation8 + $0x70] sm:$0xff] %v336_v26 }
 0x106   :  { %353 = vst [vmem:[#allocation8 + $0x78] sm:$0xff] %v337_v27 }
 0x107 PF:  { %s360_s2 = sshll.u32 %s734_s4, 4  ;;  %s543_s15 = smov [#allocation8]   ;;  %s361_s2 = int_to_ptr.hbm [resolvable:$true] %s360_s2 }
 0x108   :  { %s358_s16 = sshll.u32 %s543_s15, 4  ;;  %s544_s17 = smov 256   ;;  %s359_s16 = int_to_ptr.vmem [resolvable:$true] %s358_s16 }
 0x109   :  { %s545_s18 = smov 16  }
 0x10a   :  { %366 = dma.vmem_to_hbm [thread:$0]  %s359_s16, 2048, %s361_s2, [#allocation7], %s544_s17, %s544_s17, %s545_s18  }
 0x10b   :  { %536 = dma.done.wait [#allocation7], 2048  }
 0x10c   :  { %537 = vsyncadd [#allocation7], 4294965248 }
 0x10d   :  { %371 = vsyncpa [#allocation6], 1 }
 0x10e   :  { %372 = vsyncpa [#allocation7], 1 }

</bundles_post_ra>
